<compile_context>
chip_gen: v6e
topology: v6e:2x2x1
jax: 0.10.0
libtpu: 0.0.40
codegen_flags: <defaults>
</compile_context>

<pallas_src>
import jax
import jax.numpy as jnp
from jax.experimental import pallas as pl
from jax.experimental.pallas import tpu as pltpu


def _tagger_kernel(tokens_ref, weight_ref, vocab_ref, vocab_t_ref, default_ref, out_ref):
    tokens = tokens_ref[...]                                              # (N, E)

    # tokens @ weight  (raw parameter matmul — no transpose in the module).
    proj = jnp.dot(tokens, weight_ref[...], preferred_element_type=jnp.float32)   # (N, E)

    # Scores against the vocab rows and against the default embedding.
    s_vocab = jnp.dot(proj, vocab_t_ref[...], preferred_element_type=jnp.float32)  # (N, V)
    s_def = jnp.dot(proj, default_ref[...], preferred_element_type=jnp.float32)    # (N, 1)

    # Jointly-normalised, numerically-stable softmax over the V+1 scores.
    m = jnp.maximum(jnp.max(s_vocab, axis=-1, keepdims=True), s_def)     # (N, 1)
    e_vocab = jnp.exp(s_vocab - m)                                       # (N, V)
    e_def = jnp.exp(s_def - m)                                           # (N, 1)
    inv = 1.0 / (jnp.sum(e_vocab, axis=-1, keepdims=True) + e_def)       # (N, 1)

    sim_def = e_def * inv                                                # similarity[:, -1:]
    sim_vocab = e_vocab * inv                                            # similarity[:, :-1]

    mixed = jnp.dot(sim_vocab, vocab_ref[...], preferred_element_type=jnp.float32)  # (N, E)

    # Single lane-dense store of the whole output block.
    out_ref[...] = sim_def * tokens + mixed


def tagger_forward(tokens, vocab, weight, default_embedding):
    """Tagger.forward on the PackedSequence data.

    tokens            : (N, E)  packed-sequence token embeddings (.data)
    vocab             : (V, E)  concept vocabulary embeddings
    weight            : (E, E)  learnable similarity weight (eye at init)
    default_embedding : (E,)    learnable default ("no concept") embedding

    Returns (N, E) float32 — the .data of the output PackedSequence; the
    batch_sizes / sorted_indices of the input PackedSequence pass through
    unchanged outside this function.
    """
    N, E = tokens.shape

    tokens = tokens.astype(jnp.float32)
    weight = weight.astype(jnp.float32)
    vocab = vocab.astype(jnp.float32)
    vocab_t = jnp.transpose(vocab)                              # (E, V)  layout plumbing
    default_col = default_embedding.reshape(E, 1).astype(jnp.float32)

    return pl.pallas_call(
        _tagger_kernel,
        out_shape=jax.ShapeDtypeStruct((N, E), jnp.float32),
        in_specs=[
            pl.BlockSpec(memory_space=pltpu.VMEM),  # tokens
            pl.BlockSpec(memory_space=pltpu.VMEM),  # weight
            pl.BlockSpec(memory_space=pltpu.VMEM),  # vocab
            pl.BlockSpec(memory_space=pltpu.VMEM),  # vocab^T
            pl.BlockSpec(memory_space=pltpu.VMEM),  # default embedding (column)
        ],
        out_specs=pl.BlockSpec(memory_space=pltpu.VMEM),
    )(tokens, weight, vocab, vocab_t, default_col)


if __name__ == "__main__":
    # Small shapes consistent with the module's forward:
    #   a packed batch of 2 questions (lengths 5 and 3) -> N = 8 packed tokens,
    #   embedding_size = 128 (lane-dense), vocab of 16 concepts.
    N = 8                 # total packed tokens (batch of 2, lengths 5 + 3)
    EMBEDDING_SIZE = 128  # embedding_size
    VOCAB_SIZE = 16       # number of concept embeddings

    key = jax.random.PRNGKey(0)
    k_tok, k_voc, k_def, k_w = jax.random.split(key, 4)

    tokens = jax.random.normal(k_tok, (N, EMBEDDING_SIZE), dtype=jnp.float32)
    vocab = jax.random.normal(k_voc, (VOCAB_SIZE, EMBEDDING_SIZE), dtype=jnp.float32)
    # Module init: default_embedding ~ U[0,1), weight = eye.  Perturb the
    # weight slightly so the tokens @ weight matmul is actually exercised.
    default_embedding = jax.random.uniform(k_def, (EMBEDDING_SIZE,), dtype=jnp.float32)
    weight = (jnp.eye(EMBEDDING_SIZE, dtype=jnp.float32)
              + 0.01 * jax.random.normal(k_w, (EMBEDDING_SIZE, EMBEDDING_SIZE), dtype=jnp.float32))

    out = tagger_forward(tokens, vocab, weight, default_embedding)
    out = jax.block_until_ready(out)

    # Reference in plain JAX (mirrors the PyTorch forward exactly).
    vocab_ext = jnp.vstack([vocab, default_embedding[None, :]])             # (V+1, E)
    similarity = jax.nn.softmax(tokens @ weight @ vocab_ext.T, axis=1)      # (N, V+1)
    ref = similarity[:, -1:] * tokens + similarity[:, :-1] @ vocab          # (N, E)

    # TODO(synk): PackedSequence bookkeeping (batch_sizes / sorted_indices) has no
    # Pallas equivalent and simply passes through unchanged alongside the data.
    assert out.shape == (N, EMBEDDING_SIZE)
    assert jnp.allclose(out, ref, atol=1e-5, rtol=1e-5)

    print("KERNEL_OK")
</pallas_src>

<mosaic_0001>
module attributes {stable_mosaic.version = 11 : i64} {
  func.func @_tagger_kernel(%arg0: memref<8x128xf32, #tpu.memory_space<vmem>>, %arg1: memref<128x128xf32, #tpu.memory_space<vmem>>, %arg2: memref<16x128xf32, #tpu.memory_space<vmem>>, %arg3: memref<128x16xf32, #tpu.memory_space<vmem>>, %arg4: memref<128x1xf32, #tpu.memory_space<vmem>>, %arg5: memref<8x128xf32, #tpu.memory_space<vmem>>) attributes {dimension_semantics = [], scalar_prefetch = 0 : i64, scratch_operands = 0 : i64, tpu.core_type = #tpu.core_type<tc>} {
    %c0 = arith.constant 0 : index
    %c0_0 = arith.constant 0 : index
    %0 = vector.load %arg0[%c0, %c0_0] : memref<8x128xf32, #tpu.memory_space<vmem>>, vector<8x128xf32>
    %c0_1 = arith.constant 0 : index
    %c0_2 = arith.constant 0 : index
    %1 = vector.load %arg1[%c0_1, %c0_2] : memref<128x128xf32, #tpu.memory_space<vmem>>, vector<128x128xf32>
    %cst = arith.constant dense<0.000000e+00> : vector<8x128xf32>
    %2 = tpu.matmul %0, %1, %cst {dimension_numbers = #tpu.dot_dimension_numbers<[1], [0], [0], [1], [0, 0, 1, 1], [], []>} : vector<8x128xf32>, vector<128x128xf32>, vector<8x128xf32> -> vector<8x128xf32>
    %c0_3 = arith.constant 0 : index
    %c0_4 = arith.constant 0 : index
    %3 = vector.load %arg3[%c0_3, %c0_4] : memref<128x16xf32, #tpu.memory_space<vmem>>, vector<128x16xf32>
    %cst_5 = arith.constant dense<0.000000e+00> : vector<8x16xf32>
    %4 = tpu.matmul %2, %3, %cst_5 {dimension_numbers = #tpu.dot_dimension_numbers<[1], [0], [0], [1], [0, 0, 1, 1], [], []>} : vector<8x128xf32>, vector<128x16xf32>, vector<8x16xf32> -> vector<8x16xf32>
    %c0_6 = arith.constant 0 : index
    %c0_7 = arith.constant 0 : index
    %5 = vector.load %arg4[%c0_6, %c0_7] : memref<128x1xf32, #tpu.memory_space<vmem>>, vector<128x1xf32>
    %cst_8 = arith.constant dense<0.000000e+00> : vector<8x1xf32>
    %6 = tpu.matmul %2, %5, %cst_8 {dimension_numbers = #tpu.dot_dimension_numbers<[1], [0], [0], [1], [0, 0, 1, 1], [], []>} : vector<8x128xf32>, vector<128x1xf32>, vector<8x1xf32> -> vector<8x1xf32>
    %cst_9 = arith.constant dense<0xFF800000> : vector<8xf32>
    %7 = vector.multi_reduction <maximumf>, %4, %cst_9 [1] : vector<8x16xf32> to vector<8xf32>
    %8 = vector.shape_cast %7 : vector<8xf32> to vector<8x1xf32>
    %9 = arith.maximumf %8, %6 : vector<8x1xf32>
    %10 = vector.broadcast %9 : vector<8x1xf32> to vector<8x16xf32>
    %11 = arith.subf %4, %10 : vector<8x16xf32>
    %12 = math.exp %11 : vector<8x16xf32>
    %13 = arith.subf %6, %9 : vector<8x1xf32>
    %14 = math.exp %13 : vector<8x1xf32>
    %cst_10 = arith.constant dense<0.000000e+00> : vector<8xf32>
    %15 = vector.multi_reduction <add>, %12, %cst_10 [1] : vector<8x16xf32> to vector<8xf32>
    %16 = vector.shape_cast %15 : vector<8xf32> to vector<8x1xf32>
    %17 = arith.addf %16, %14 : vector<8x1xf32>
    %cst_11 = arith.constant 1.000000e+00 : f32
    %18 = vector.broadcast %cst_11 : f32 to vector<8x1xf32>
    %19 = arith.divf %18, %17 : vector<8x1xf32>
    %20 = arith.mulf %14, %19 : vector<8x1xf32>
    %21 = vector.broadcast %19 : vector<8x1xf32> to vector<8x16xf32>
    %22 = arith.mulf %12, %21 : vector<8x16xf32>
    %c0_12 = arith.constant 0 : index
    %c0_13 = arith.constant 0 : index
    %23 = vector.load %arg2[%c0_12, %c0_13] : memref<16x128xf32, #tpu.memory_space<vmem>>, vector<16x128xf32>
    %cst_14 = arith.constant dense<0.000000e+00> : vector<8x128xf32>
    %24 = tpu.matmul %22, %23, %cst_14 {dimension_numbers = #tpu.dot_dimension_numbers<[1], [0], [0], [1], [0, 0, 1, 1], [], []>} : vector<8x16xf32>, vector<16x128xf32>, vector<8x128xf32> -> vector<8x128xf32>
    %25 = vector.broadcast %20 : vector<8x1xf32> to vector<8x128xf32>
    %26 = arith.mulf %25, %0 : vector<8x128xf32>
    %27 = arith.addf %26, %24 : vector<8x128xf32>
    %c0_15 = arith.constant 0 : index
    %c0_16 = arith.constant 0 : index
    %28 = vector.load %arg5[%c0_15, %c0_16] : memref<8x128xf32, #tpu.memory_space<vmem>>, vector<8x128xf32>
    tpu.vector_store %arg5[%c0_15, %c0_16], %27 {strides = array<i32>} : memref<8x128xf32, #tpu.memory_space<vmem>>, vector<8x128xf32>,
    return
  }
}

</mosaic_0001>

<bundles_post_ra>
// kernel: tpu_custom_call.1
= control target key start
LH: loop header
LB: loop body
LE: loop exit
PB: predicated region body
PF: predicated region fallthrough
CT: control target
= control target key end

     0   :  { %v607_v1 = vmov 0.0   ;;  %vm608_vm0 = vmmov 0   ;;  %s862_s0 = inlined_call_operand.vmem [shape: f32[8,128], index: 0, kind: input, shape index: {}]   ;;  %s863_s1 = inlined_call_operand.vmem [shape: f32[128,128], index: 1, kind: input, shape index: {}]   ;;  %s864_s2 = inlined_call_operand.vmem [shape: f32[16,128], index: 2, kind: input, shape index: {}]   ;;  %s865_s3 = inlined_call_operand.vmem [shape: f32[128,16], index: 3, kind: input, shape index: {}]   ;;  %s866_s4 = inlined_call_operand.vmem [shape: f32[128,1], index: 4, kind: input, shape index: {}]   ;;  %s867_s5 = inlined_call_operand.hbm [shape: f32[8,128], index: 5, kind: output, shape index: {}]  }
   0x1   :  { %v37_v0 = vld [vmem:[%s863_s1 + $0x78] sm:$0xff]  ;;  %461 = vmatprep.subr.mxu0 %v607_v1  ;;  %v36_v2 = vld [vmem:[%s863_s1 + $0x70] sm:$0xff]  ;;  %493 = vmatprep.mubr.msk.f32.mxu0 %vm608_vm0, %v607_v1  ;;  %v35_v3 = vld [vmem:[%s863_s1 + $0x68] sm:$0xff] }
   0x2   :  { %462 = vmatpush3.msra.mxu0 %v37_v0  ;;  %496 = vmatprep.subr.mxu1 %v607_v1  ;;  %v34_v4 = vld [vmem:[%s863_s1 + $0x60] sm:$0xff]  ;;  %v123_v5 = vld [vmem:[%s865_s3 + $0x78] sm:$0xff]  ;;  %v122_v6 = vld [vmem:[%s865_s3 + $0x70] sm:$0xff] }
   0x3   :  { %463 = vmatprep.subr.mxu0 %v607_v1  ;;  %528 = vmatprep.mubr.msk.f32.mxu1 %vm608_vm0, %v607_v1  ;;  %v33_v7 = vld [vmem:[%s863_s1 + $0x58] sm:$0xff]  ;;  %v121_v8 = vld [vmem:[%s865_s3 + $0x68] sm:$0xff]  ;;  %v32_v9 = vld [vmem:[%s863_s1 + $0x50] sm:$0xff] }
   0x4   :  { %464 = vmatpush3.msra.mxu0 %v36_v2  ;;  %497 = vmatpush3.msra.mxu1 %v123_v5  ;;  %v120_v10 = vld [vmem:[%s865_s3 + $0x60] sm:$0xff]  ;;  %v31_v11 = vld [vmem:[%s863_s1 + $0x48] sm:$0xff]  ;;  %v119_v12 = vld [vmem:[%s865_s3 + $0x58] sm:$0xff] }
   0x5   :  { %465 = vmatprep.subr.mxu0 %v607_v1  ;;  %498 = vmatprep.subr.mxu1 %v607_v1  ;;  %v30_v13 = vld [vmem:[%s863_s1 + $0x40] sm:$0xff]  ;;  %v118_v14 = vld [vmem:[%s865_s3 + $0x50] sm:$0xff]  ;;  %v29_v15 = vld [vmem:[%s863_s1 + $0x38] sm:$0xff] }
   0x6   :  { %466 = vmatpush3.msra.mxu0 %v35_v3  ;;  %499 = vmatpush3.msra.mxu1 %v122_v6  ;;  %v117_v16 = vld [vmem:[%s865_s3 + $0x48] sm:$0xff] }
   0x7   :  { %467 = vmatprep.subr.mxu0 %v607_v1  ;;  %500 = vmatprep.subr.mxu1 %v607_v1 }
   0x8   :  { %468 = vmatpush3.msra.mxu0 %v34_v4  ;;  %501 = vmatpush3.msra.mxu1 %v121_v8 }
   0x9   :  { %469 = vmatprep.subr.mxu0 %v607_v1  ;;  %502 = vmatprep.subr.mxu1 %v607_v1 }
   0xa   :  { %470 = vmatpush3.msra.mxu0 %v33_v7  ;;  %503 = vmatpush3.msra.mxu1 %v120_v10 }
   0xb   :  { %471 = vmatprep.subr.mxu0 %v607_v1  ;;  %504 = vmatprep.subr.mxu1 %v607_v1 }
   0xc   :  { %472 = vmatpush3.msra.mxu0 %v32_v9  ;;  %505 = vmatpush3.msra.mxu1 %v119_v12 }
   0xd   :  { %473 = vmatprep.subr.mxu0 %v607_v1  ;;  %506 = vmatprep.subr.mxu1 %v607_v1 }
   0xe   :  { %474 = vmatpush3.msra.mxu0 %v31_v11 }
   0xf   :  { %475 = vmatprep.subr.mxu0 %v607_v1 }
  0x10   :  { %10 = vsyncpa [#allocation3], 0  ;;  %476 = vmatpush3.msra.mxu0 %v30_v13  ;;  %507 = vmatpush3.msra.mxu1 %v118_v14  ;;  %v28_v17 = vld [vmem:[%s863_s1 + $0x30] sm:$0xff]  ;;  %v116_v18 = vld [vmem:[%s865_s3 + $0x40] sm:$0xff]  ;;  %vm280_vm1 = vcmask 130048   ;;  %v609_v57 = vmov 0  }
  0x11   :  { %477 = vmatprep.subr.mxu0 %v607_v1  ;;  %508 = vmatprep.subr.mxu1 %v607_v1  ;;  %v27_v19 = vld [vmem:[%s863_s1 + $0x28] sm:$0xff]  ;;  %v115_v20 = vld [vmem:[%s865_s3 + $0x38] sm:$0xff]  ;;  %v26_v21 = vld [vmem:[%s863_s1 + $0x20] sm:$0xff]  ;;  %s610_s14 = smov [#allocation2]  }
  0x12   :  { %478 = vmatpush3.msra.mxu0 %v29_v15  ;;  %509 = vmatpush3.msra.mxu1 %v117_v16  ;;  %v114_v22 = vld [vmem:[%s865_s3 + $0x30] sm:$0xff]  ;;  %v25_v23 = vld [vmem:[%s863_s1 + $0x18] sm:$0xff]  ;;  %v113_v24 = vld [vmem:[%s865_s3 + $0x28] sm:$0xff]  ;;  %s398_s15 = sshll.u32 %s610_s14, 4  ;;  %s399_s15 = int_to_ptr.vmem [resolvable:$true] %s398_s15 }
  0x13   :  { %479 = vmatprep.subr.mxu0 %v607_v1  ;;  %510 = vmatprep.subr.mxu1 %v607_v1  ;;  %v24_v25 = vld [vmem:[%s863_s1 + $0x10] sm:$0xff]  ;;  %v112_v26 = vld [vmem:[%s865_s3 + $0x20] sm:$0xff]  ;;  %v23_v27 = vld [vmem:[%s863_s1 + $0x8] sm:$0xff]  ;;  %p590_p1 = scmp.lt.s32.totalorder %s399_s15, %s399_s15 }
  0x14   :  { %480 = vmatpush3.msra.mxu0 %v28_v17  ;;  %511 = vmatpush3.msra.mxu1 %v116_v18  ;;  %v111_v28 = vld [vmem:[%s865_s3 + $0x18] sm:$0xff]  ;;  %v22_v29 = vld [vmem:[%s863_s1] sm:$0xff]  ;;  %v110_v30 = vld [vmem:[%s865_s3 + $0x10] sm:$0xff] }
  0x15   :  { %481 = vmatprep.subr.mxu0 %v607_v1  ;;  %512 = vmatprep.subr.mxu1 %v607_v1  ;;  %v766_v31 = vld [vmem:[%s862_s0] sm:$0xff]  ;;  %v209_v32 = vld [vmem:[%s866_s4 + $0x78] sm:$0xff]  ;;  %v109_v33 = vld [vmem:[%s865_s3 + $0x8] sm:$0xff] }
  0x16   :  { %482 = vmatpush3.msra.mxu0 %v27_v19  ;;  %513 = vmatpush3.msra.mxu1 %v115_v20  ;;  %v208_v34 = vld [vmem:[%s866_s4 + $0x70] sm:$0xff]  ;;  %v207_v35 = vld [vmem:[%s866_s4 + $0x68] sm:$0xff]  ;;  %v206_v36 = vld [vmem:[%s866_s4 + $0x60] sm:$0xff] }
  0x17   :  { %483 = vmatprep.subr.mxu0 %v607_v1  ;;  %514 = vmatprep.subr.mxu1 %v607_v1  ;;  %v205_v37 = vld [vmem:[%s866_s4 + $0x58] sm:$0xff]  ;;  %v204_v38 = vld [vmem:[%s866_s4 + $0x50] sm:$0xff]  ;;  %v203_v39 = vld [vmem:[%s866_s4 + $0x48] sm:$0xff] }
  0x18   :  { %484 = vmatpush3.msra.mxu0 %v26_v21  ;;  %515 = vmatpush3.msra.mxu1 %v114_v22  ;;  %v202_v40 = vld [vmem:[%s866_s4 + $0x40] sm:$0xff]  ;;  %v201_v41 = vld [vmem:[%s866_s4 + $0x38] sm:$0xff]  ;;  %v200_v42 = vld [vmem:[%s866_s4 + $0x30] sm:$0xff] }
  0x19   :  { %485 = vmatprep.subr.mxu0 %v607_v1  ;;  %516 = vmatprep.subr.mxu1 %v607_v1  ;;  %v199_v43 = vld [vmem:[%s866_s4 + $0x28] sm:$0xff]  ;;  %v198_v44 = vld [vmem:[%s866_s4 + $0x20] sm:$0xff]  ;;  %v197_v45 = vld [vmem:[%s866_s4 + $0x18] sm:$0xff] }
  0x1a   :  { %486 = vmatpush3.msra.mxu0 %v25_v23  ;;  %517 = vmatpush3.msra.mxu1 %v113_v24  ;;  %v196_v46 = vld [vmem:[%s866_s4 + $0x10] sm:$0xff]  ;;  %v195_v47 = vld [vmem:[%s866_s4 + $0x8] sm:$0xff]  ;;  %v108_v48 = vld [vmem:[%s865_s3] sm:$0xff] }
  0x1b   :  { %487 = vmatprep.subr.mxu0 %v607_v1  ;;  %518 = vmatprep.subr.mxu1 %v607_v1  ;;  %v194_v49 = vld [vmem:[%s866_s4] sm:$0xff]  ;;  %v310_v2 = vld [vmem:[%s864_s2 + $0x8] sm:$0xff] }
  0x1c   :  { %488 = vmatpush3.msra.mxu0 %v24_v25  ;;  %519 = vmatpush3.msra.mxu1 %v112_v26  ;;  %v309_v8 = vld [vmem:[%s864_s2] sm:$0xff]  ;;  %s585_s2 = scalar_lea.vmem %s399_s15, 128 }
  0x1d   :  { %489 = vmatprep.subr.mxu0 %v607_v1  ;;  %520 = vmatprep.subr.mxu1 %v607_v1  ;;  %p586_p0 = scmp.ne.s32.totalorder %s399_s15, %s585_s2  ;;  %p591_p2 = scmp.lt.s32.totalorder %s585_s2, %s585_s2 }
  0x1e   :  { %490 = vmatpush3.msra.mxu0 %v23_v27  ;;  %521 = vmatpush3.msra.mxu1 %v111_v28 }
  0x1f   :  { %491 = vmatprep.subr.mxu0 %v607_v1  ;;  %522 = vmatprep.subr.mxu1 %v607_v1  ;;  %p592_p3 = por %p591_p2, %p590_p1 }
  0x20   :  { %492 = vmatpush3.msra.mxu0 %v22_v29  ;;  %523 = vmatpush3.msra.mxu1 %v110_v30 }
  0x21   :  { %494 = vmatmul.mubr.f32.vlgmr.msra.gmra.mxu0 %v766_v31  ;;  %531 = vmatprep.subr.mxu0 %v607_v1  ;;  %p593_p4 = pnand %p592_p3, %p586_p0 }
  0x22   :  { %532 = vmatpush3.msra.mxu0 %v209_v32  ;;  %524 = vmatprep.subr.mxu1 %v607_v1 }
  0x23   :  { %533 = vmatprep.subr.mxu0 %v607_v1  ;;  %525 = vmatpush3.msra.mxu1 %v109_v33 }
  0x24   :  { %534 = vmatpush3.msra.mxu0 %v208_v34  ;;  %526 = vmatprep.subr.mxu1 %v607_v1 }
  0x25   :  { %535 = vmatprep.subr.mxu0 %v607_v1  ;;  %563 = vmatprep.mubr.msk.f32.mxu0 %vm608_vm0, %v607_v1 }
  0x26   :  { %536 = vmatpush3.msra.mxu0 %v207_v35  ;;  %527 = vmatpush3.msra.mxu1 %v108_v48 }
  0x27   :  { %537 = vmatprep.subr.mxu0 %v607_v1  ;;  %566 = vmatprep.subr.mxu1 %v607_v1 }
  0x28   :  { %538 = vmatpush3.msra.mxu0 %v206_v36  ;;  %577 = vset.pattern.permute.xlu0 %v609_v57 }
  0x29   :  { %539 = vmatprep.subr.mxu0 %v607_v1  ;;  %578 = vset.pattern.permute.xlu1 %v609_v57 }
  0x2a   :  { %540 = vmatpush3.msra.mxu0 %v205_v37 }
  0x2b   :  { %541 = vmatprep.subr.mxu0 %v607_v1 }
  0x2c   :  { %542 = vmatpush3.msra.mxu0 %v204_v38 }
  0x2d   :  { %543 = vmatprep.subr.mxu0 %v607_v1 }
  0x2e   :  { %544 = vmatpush3.msra.mxu0 %v203_v39 }
  0x2f   :  { %545 = vmatprep.subr.mxu0 %v607_v1 }
  0x30   :  { %546 = vmatpush3.msra.mxu0 %v202_v40 }
  0x31   :  { %547 = vmatprep.subr.mxu0 %v607_v1 }
  0x32   :  { %548 = vmatpush3.msra.mxu0 %v201_v41 }
  0x33   :  { %549 = vmatprep.subr.mxu0 %v607_v1 }
  0x34   :  { %550 = vmatpush3.msra.mxu0 %v200_v42 }
  0x35   :  { %551 = vmatprep.subr.mxu0 %v607_v1 }
  0x36   :  { %552 = vmatpush3.msra.mxu0 %v199_v43 }
  0x37   :  { %553 = vmatprep.subr.mxu0 %v607_v1 }
  0x38   :  { %554 = vmatpush3.msra.mxu0 %v198_v44 }
  0x39   :  { %555 = vmatprep.subr.mxu0 %v607_v1 }
  0x3a   :  { %556 = vmatpush3.msra.mxu0 %v197_v45 }
  0x3b   :  { %557 = vmatprep.subr.mxu0 %v607_v1 }
  0x3c   :  { %558 = vmatpush3.msra.mxu0 %v196_v46 }
  0x3d   :  { %559 = vmatprep.subr.mxu0 %v607_v1 }
  0x3e   :  { %560 = vmatpush3.msra.mxu0 %v195_v47 }
  0x3f   :  { %561 = vmatprep.subr.mxu0 %v607_v1 }
  0x40   :  { %562 = vmatpush3.msra.mxu0 %v194_v49 }
  0xe1   :  { %v104_v50 = vpop.f32.mrf.mxu0 }
  0xe2   :  { %529 = vmatmul.mubr.f32.vlgmr.msra.gmra.mxu1 %v104_v50  ;;  %564 = vmatmul.mubr.f32.vlgmr.msra.gmra.mxu0 %v104_v50 }
  0xe3   :  { %v495_v51 = vpop.f32.mrf.mxu0  ;;  %570 = vmatprep.mubr.msk.f32.mxu1 %vm608_vm0, %v607_v1  ;;  %567 = vmatpush3.msra.mxu1 %v310_v2 }
  0xe4   :  { %568 = vmatprep.subr.mxu1 %v607_v1 }
  0xe5   :  { %569 = vmatpush3.msra.mxu1 %v309_v8 }
 0x1a2   :  { %v190_v52 = vpop.f32.mrf.mxu1  ;;  %v276_v53 = vpop.f32.mrf.mxu0 }
 0x1a3   :  { %v281_v54 = vsel %vm280_vm1, %v190_v52, -inf }
 0x1a4   :  { %282 = vmax.xlane.f32.xlu0 %v281_v54  ;;  %v530_v55 = vpop.f32.mrf.mxu1  ;;  %v565_v56 = vpop.f32.mrf.mxu0 }
 0x22d   :  { %v283_v58 = vpop.xlane.xlu0 %282 }
 0x22e   :  { %v284_v59 = vmax.f32 %v283_v58, %v276_v53 }
 0x230   :  { %287 = vperm.xlu0 %577, %v284_v59   ;;  %v293_v3 = vsub.f32 %v276_v53, %v284_v59 }
 0x232   :  { %v294_v4 = vmul.f32 1.442695, %v293_v3 }
 0x2ab   :  { %v288_v60 = vpop.permute.xlu0 %287 }
 0x2ac   :  { %v290_v61 = vsub.f32 %v190_v52, %v288_v60 }
 0x2ae   :  { %v291_v62 = vmul.f32 1.442695, %v290_v61 }
 0x2b0   :  { %579 = vpow2.f32 %v291_v62 }
 0x2b1   :  { %581 = vpow2.f32 %v294_v4 }
 0x2bd   :  { %v580_v63 = vpop.eup %579 }
 0x2be   :  { %v296_v0 = vsel %vm280_vm1, %v580_v63, 0.0  ;;  %v582_v5 = vpop.eup %581 }
 0x2bf   :  { %297 = vadd.xlane.f32.xlu1 %v296_v0 }
 0x348   :  { %v298_v6 = vpop.xlane.xlu1 %297 }
 0x349   :  { %v299_v7 = vadd.f32 %v582_v5, %v298_v6 }
 0x34b   :  { %583 = vrcp.f32 %v299_v7 }
 0x358   :  { %v584_v9 = vpop.eup %583 }
 0x359   :  { %305 = vperm.xlu1 %578, %v584_v9   ;;  %v302_v10 = vmul.f32 %v584_v9, %v582_v5 }
 0x35d   :  { %386 = vperm.xlu1 %578, %v302_v10  }
 0x3d4   :  { %v306_v11 = vpop.permute.xlu1 %305 }
 0x3d5   :  { %v308_v12 = vmul.f32 %v580_v63, %v306_v11 }
 0x3d7   :  { %571 = vmatmul.mubr.msk.f32.vlgmr.msra.gmra.mxu1 %vm280_vm1, %v308_v12 }
 0x3d8   :  { %v387_v1 = vpop.permute.xlu1 %386 }
 0x3d9   :  { %v389_v13 = vmul.f32 %v387_v1, %v766_v31 }
 0x497   :  { %v380_v14 = vpop.f32.mrf.mxu1 }
 0x498   :  { %v390_v15 = vadd.f32 %v389_v13, %v380_v14 }
 0x499   :  { %v572_v16 = vpop.f32.mrf.mxu1 }
 0x49a   :  { %391 = vst [vmem:[#allocation2] sm:$0xff] %v390_v15 }
 0x49b   :  { %596 = shalt.err (!%p593_p4)
}
 0x49c   :  { %401 = dma.vmem_to_hbm [thread:$0]  %s399_s15, 128, %s867_s5, [#allocation3]  }
 0x49d   :  { %605 = dma.done.wait [#allocation3], 128  }
 0x49e   :  { %606 = vsyncadd [#allocation3], 4294967168 }
 0x49f   :  { %405 = vsyncpa [#allocation3], 1 }

</bundles_post_ra>
